<compile_context>
chip_gen: v7x
topology: tpu7x:2x2x1
jax: 0.10.0
libtpu: 0.0.40
codegen_flags: <defaults>
</compile_context>

<pallas_src>
import jax
import jax.numpy as jnp
from jax.experimental import pallas as pl
from jax.experimental.pallas import tpu as pltpu

BN_EPS = 1e-5


def _cpa_kernel(w_ref, b_ref, x_ref, sc_ref, o_ref):
    # In-kernel shapes:
    #   w_ref : (dim, C_in)    BN-folded weight (f32)
    #   b_ref : (dim, 1)       BN-folded bias   (f32)
    #   x_ref : (Bb, C_in, T)  input tile, spatial-last (lane-dense)
    #   sc_ref: (Bb, dim,  T)  residual tile
    #   o_ref : (Bb, dim,  T)  output tile
    x = x_ref[...].astype(jnp.float32)      # (Bb, C_in, T), f32 accumulate
    sc = sc_ref[...].astype(jnp.float32)    # (Bb, dim,  T)
    w = w_ref[...]                          # (dim, C_in)

    acc = sc + b_ref[...][None, :, :]       # bias broadcast over batch & lanes
    # C_in is tiny (e.g. 4): unrolled broadcast-FMAs on the VPU. The kernel is
    # HBM-bandwidth bound, so MXU staging / stride-0 load tricks buy nothing.
    for c in range(x.shape[1]):
        acc = acc + w[None, :, c:c + 1] * x[:, c:c + 1, :]

    o_ref[...] = acc.astype(o_ref.dtype)


def _choose_tile_hw(wh, max_tile_hw):
    """Lane tile: multiple of 128 whenever WH > 128, capped for VMEM."""
    if wh <= 128:
        return wh                          # full-extent block (exempt from rule)
    cap = max(128, (min(wh, max_tile_hw) // 128) * 128)
    t = cap
    while t >= 128:                        # prefer an exact divisor (no partial)
        if wh % t == 0:
            return t
        t -= 128
    return cap                             # cdiv grid masks only the last tile


def _choose_batch_block(batch, n_spatial, per_batch_bytes, target_bytes):
    """Fuse batch entries per block to amortize per-grid-step overhead."""
    bb = max(1, min(batch, target_bytes // max(per_batch_bytes, 1)))
    # Megacore / 2-TC (v7x): keep at least 2 total grid steps when possible.
    while bb > 1 and pl.cdiv(batch, bb) * n_spatial < 2:
        bb -= 1
    return bb


def cpa_lite_forward(x, sc_x, params, *, max_tile_hw=8192):
    """x: (B, C_in, W, H) NCHW; sc_x: (B, dim, W, H) NCHW. Returns NCHW.

    x / sc_x may be f32 or bf16 (must match); output uses the same dtype while
    all in-kernel accumulation is f32.
    """
    B, C_in, W, H = x.shape
    dim = params["w"].shape[1]
    assert sc_x.shape == (B, dim, W, H)
    assert x.dtype == sc_x.dtype, "x and sc_x must share a storage dtype"
    WH = W * H

    # Fold eval-mode BatchNorm into the linear (host-side, tiny tensors).
    scale = params["gamma"] * jax.lax.rsqrt(params["var"] + BN_EPS)     # (1, dim)
    w_fold = (params["w"] * scale).T.astype(jnp.float32)                # (dim, C_in)
    b_fold = ((params["b"] - params["mean"]) * scale
              + params["beta"]).reshape(dim, 1).astype(jnp.float32)     # (dim, 1)

    # Free (contiguous) views: NCHW -> (B, C, W*H); spatial axis is lane axis.
    x3 = x.reshape(B, C_in, WH)
    sc3 = sc_x.reshape(B, dim, WH)

    itemsize = jnp.dtype(x.dtype).itemsize
    tile_hw = _choose_tile_hw(WH, max_tile_hw)
    n_spatial = pl.cdiv(WH, tile_hw)
    per_batch_bytes = tile_hw * (C_in + 2 * dim) * itemsize
    bb = _choose_batch_block(B, n_spatial, per_batch_bytes, target_bytes=1 << 19)
    grid = (pl.cdiv(B, bb), n_spatial)

    cost = pl.CostEstimate(
        flops=2 * B * WH * dim * C_in,
        transcendentals=0,
        bytes_accessed=(x3.size + 2 * sc3.size) * itemsize,
    )

    out3 = pl.pallas_call(
        _cpa_kernel,
        out_shape=jax.ShapeDtypeStruct((B, dim, WH), x.dtype),
        grid_spec=pltpu.PrefetchScalarGridSpec(
            num_scalar_prefetch=0,
            grid=grid,
            in_specs=[
                pl.BlockSpec((dim, C_in), lambda b, s: (0, 0)),            # folded W
                pl.BlockSpec((dim, 1), lambda b, s: (0, 0)),               # folded b
                pl.BlockSpec((bb, C_in, tile_hw), lambda b, s: (b, 0, s)),  # x
                pl.BlockSpec((bb, dim, tile_hw), lambda b, s: (b, 0, s)),   # sc_x
            ],
            out_specs=pl.BlockSpec((bb, dim, tile_hw), lambda b, s: (b, 0, s)),
        ),
        compiler_params=pltpu.CompilerParams(
            dimension_semantics=("parallel", "parallel")),
        cost_estimate=cost,
        # If the caller no longer needs sc_x, pass input_output_aliases={3: 0}
        # here to reuse its HBM buffer for the output (no extra allocation).
    )(w_fold, b_fold, x3, sc3)

    return out3.reshape(B, dim, W, H)


def _reference(x, sc_x, params):
    """Pure-JAX reference (unfused) for correctness check."""
    y = jnp.einsum("bcwh,cd->bwhd", x, params["w"]) + params["b"][0]
    inv_std = jax.lax.rsqrt(params["var"][0] + BN_EPS)
    y = (y - params["mean"][0]) * inv_std * params["gamma"][0] + params["beta"][0]
    y = jnp.transpose(y, (0, 3, 1, 2))
    return sc_x + y


if __name__ == "__main__":
    # Small shapes consistent with the module: B=2, C_in=4, W=H=16, dim=8.
    B, C_in, W, H, dim = 2, 4, 16, 16, 8

    key = jax.random.PRNGKey(0)
    kx, ksc, kw, kb, kg, kbe, km, kv = jax.random.split(key, 8)

    x_f32 = jax.random.normal(kx, (B, C_in, W, H), dtype=jnp.float32)
    sc_f32 = jax.random.normal(ksc, (B, dim, W, H), dtype=jnp.float32)

    params = {
        "w": jax.random.normal(kw, (C_in, dim), dtype=jnp.float32) * 0.1,
        "b": jax.random.normal(kb, (1, dim), dtype=jnp.float32) * 0.1,
        "gamma": 1.0 + 0.1 * jax.random.normal(kg, (1, dim), dtype=jnp.float32),
        "beta": 0.1 * jax.random.normal(kbe, (1, dim), dtype=jnp.float32),
        "mean": 0.1 * jax.random.normal(km, (1, dim), dtype=jnp.float32),
        "var": jnp.abs(jax.random.normal(kv, (1, dim), dtype=jnp.float32)) + 0.5,
    }

    # --- f32 storage path (matches the PyTorch default dtype) ---
    out_f32 = jax.block_until_ready(cpa_lite_forward(x_f32, sc_f32, params))
    ref_f32 = _reference(x_f32, sc_f32, params)
    assert out_f32.shape == (B, dim, W, H)
    assert jnp.allclose(out_f32, ref_f32, atol=1e-4, rtol=1e-4), "f32 mismatch"

    # --- bf16 storage path (f32 accumulation in-kernel; ~2x less HBM bytes) ---
    x_bf = x_f32.astype(jnp.bfloat16)
    sc_bf = sc_f32.astype(jnp.bfloat16)
    out_bf = jax.block_until_ready(cpa_lite_forward(x_bf, sc_bf, params))
    ref_bf = _reference(x_bf.astype(jnp.float32), sc_bf.astype(jnp.float32), params)
    assert out_bf.dtype == jnp.bfloat16
    assert jnp.allclose(out_bf.astype(jnp.float32), ref_bf,
                        atol=3e-2, rtol=3e-2), "bf16 mismatch"

    print("KERNEL_OK")
</pallas_src>

<mosaic_0001>
module attributes {stable_mosaic.version = 11 : i64} {
  func.func @_cpa_kernel(%arg0: i32, %arg1: i32, %arg2: memref<8x4xf32, #tpu.memory_space<vmem>>, %arg3: memref<8x1xf32, #tpu.memory_space<vmem>>, %arg4: memref<1x4x256xf32, #tpu.memory_space<vmem>>, %arg5: memref<1x8x256xf32, #tpu.memory_space<vmem>>, %arg6: memref<1x8x256xf32, #tpu.memory_space<vmem>>) attributes {dimension_semantics = [#tpu.dimension_semantics<parallel>, #tpu.dimension_semantics<parallel>], iteration_bounds = array<i64: 2, 1>, scalar_prefetch = 0 : i64, scratch_operands = 0 : i64, tpu.core_type = #tpu.core_type<tc>, window_params = [{pipeline_mode = #tpu.pipeline_mode<synchronous>, transform_indices = @transform_0, window_bounds = array<i64: 8, 4>}, {pipeline_mode = #tpu.pipeline_mode<synchronous>, transform_indices = @transform_1, window_bounds = array<i64: 8, 1>}, {transform_indices = @transform_2, window_bounds = array<i64: 1, 4, 256>}, {transform_indices = @transform_3, window_bounds = array<i64: 1, 8, 256>}, {transform_indices = @transform_4, window_bounds = array<i64: 1, 8, 256>}]} {
    %c0 = arith.constant 0 : index
    %c0_0 = arith.constant 0 : index
    %c0_1 = arith.constant 0 : index
    %0 = vector.load %arg4[%c0, %c0_0, %c0_1] : memref<1x4x256xf32, #tpu.memory_space<vmem>>, vector<1x4x256xf32>
    %c0_2 = arith.constant 0 : index
    %c0_3 = arith.constant 0 : index
    %c0_4 = arith.constant 0 : index
    %1 = vector.load %arg5[%c0_2, %c0_3, %c0_4] : memref<1x8x256xf32, #tpu.memory_space<vmem>>, vector<1x8x256xf32>
    %c0_5 = arith.constant 0 : index
    %c0_6 = arith.constant 0 : index
    %2 = vector.load %arg2[%c0_5, %c0_6] : memref<8x4xf32, #tpu.memory_space<vmem>>, vector<8x4xf32>
    %c0_7 = arith.constant 0 : index
    %c0_8 = arith.constant 0 : index
    %3 = vector.load %arg3[%c0_7, %c0_8] : memref<8x1xf32, #tpu.memory_space<vmem>>, vector<8x1xf32>
    %4 = vector.shape_cast %3 : vector<8x1xf32> to vector<1x8x1xf32>
    %5 = vector.broadcast %4 : vector<1x8x1xf32> to vector<1x8x256xf32>
    %6 = arith.addf %1, %5 : vector<1x8x256xf32>
    %7 = vector.extract_strided_slice %2 {offsets = [0, 0], sizes = [8, 1], strides = [1, 1]} : vector<8x4xf32> to vector<8x1xf32>
    %8 = vector.shape_cast %7 : vector<8x1xf32> to vector<1x8x1xf32>
    %9 = vector.extract_strided_slice %0 {offsets = [0, 0, 0], sizes = [1, 1, 256], strides = [1, 1, 1]} : vector<1x4x256xf32> to vector<1x1x256xf32>
    %10 = vector.broadcast %8 : vector<1x8x1xf32> to vector<1x8x256xf32>
    %11 = vector.broadcast %9 : vector<1x1x256xf32> to vector<1x8x256xf32>
    %12 = arith.mulf %10, %11 : vector<1x8x256xf32>
    %13 = arith.addf %6, %12 : vector<1x8x256xf32>
    %14 = vector.extract_strided_slice %2 {offsets = [0, 1], sizes = [8, 1], strides = [1, 1]} : vector<8x4xf32> to vector<8x1xf32>
    %15 = vector.shape_cast %14 : vector<8x1xf32> to vector<1x8x1xf32>
    %16 = vector.extract_strided_slice %0 {offsets = [0, 1, 0], sizes = [1, 1, 256], strides = [1, 1, 1]} : vector<1x4x256xf32> to vector<1x1x256xf32>
    %17 = vector.broadcast %15 : vector<1x8x1xf32> to vector<1x8x256xf32>
    %18 = vector.broadcast %16 : vector<1x1x256xf32> to vector<1x8x256xf32>
    %19 = arith.mulf %17, %18 : vector<1x8x256xf32>
    %20 = arith.addf %13, %19 : vector<1x8x256xf32>
    %21 = vector.extract_strided_slice %2 {offsets = [0, 2], sizes = [8, 1], strides = [1, 1]} : vector<8x4xf32> to vector<8x1xf32>
    %22 = vector.shape_cast %21 : vector<8x1xf32> to vector<1x8x1xf32>
    %23 = vector.extract_strided_slice %0 {offsets = [0, 2, 0], sizes = [1, 1, 256], strides = [1, 1, 1]} : vector<1x4x256xf32> to vector<1x1x256xf32>
    %24 = vector.broadcast %22 : vector<1x8x1xf32> to vector<1x8x256xf32>
    %25 = vector.broadcast %23 : vector<1x1x256xf32> to vector<1x8x256xf32>
    %26 = arith.mulf %24, %25 : vector<1x8x256xf32>
    %27 = arith.addf %20, %26 : vector<1x8x256xf32>
    %28 = vector.extract_strided_slice %2 {offsets = [0, 3], sizes = [8, 1], strides = [1, 1]} : vector<8x4xf32> to vector<8x1xf32>
    %29 = vector.shape_cast %28 : vector<8x1xf32> to vector<1x8x1xf32>
    %30 = vector.extract_strided_slice %0 {offsets = [0, 3, 0], sizes = [1, 1, 256], strides = [1, 1, 1]} : vector<1x4x256xf32> to vector<1x1x256xf32>
    %31 = vector.broadcast %29 : vector<1x8x1xf32> to vector<1x8x256xf32>
    %32 = vector.broadcast %30 : vector<1x1x256xf32> to vector<1x8x256xf32>
    %33 = arith.mulf %31, %32 : vector<1x8x256xf32>
    %34 = arith.addf %27, %33 : vector<1x8x256xf32>
    %c0_9 = arith.constant 0 : index
    %c0_10 = arith.constant 0 : index
    %c0_11 = arith.constant 0 : index
    %35 = vector.load %arg6[%c0_9, %c0_10, %c0_11] : memref<1x8x256xf32, #tpu.memory_space<vmem>>, vector<1x8x256xf32>
    tpu.vector_store %arg6[%c0_9, %c0_10, %c0_11], %34 {strides = array<i32>} : memref<1x8x256xf32, #tpu.memory_space<vmem>>, vector<1x8x256xf32>,
    return
  }
  func.func @transform_0(%arg0: i32, %arg1: i32) -> (i32, i32) {
    %c0_i32 = arith.constant 0 : i32
    %c0_i32_0 = arith.constant 0 : i32
    %c0_i32_1 = arith.constant 0 : i32
    return %c0_i32, %c0_i32_0 : i32, i32
  }
  func.func @transform_1(%arg0: i32, %arg1: i32) -> (i32, i32) {
    %c0_i32 = arith.constant 0 : i32
    %c0_i32_0 = arith.constant 0 : i32
    %c0_i32_1 = arith.constant 0 : i32
    return %c0_i32, %c0_i32_0 : i32, i32
  }
  func.func @transform_2(%arg0: i32, %arg1: i32) -> (i32, i32, i32) {
    %c0_i32 = arith.constant 0 : i32
    %c0_i32_0 = arith.constant 0 : i32
    return %arg0, %c0_i32, %arg1 : i32, i32, i32
  }
  func.func @transform_3(%arg0: i32, %arg1: i32) -> (i32, i32, i32) {
    %c0_i32 = arith.constant 0 : i32
    %c0_i32_0 = arith.constant 0 : i32
    return %arg0, %c0_i32, %arg1 : i32, i32, i32
  }
  func.func @transform_4(%arg0: i32, %arg1: i32) -> (i32, i32, i32) {
    %c0_i32 = arith.constant 0 : i32
    %c0_i32_0 = arith.constant 0 : i32
    return %arg0, %c0_i32, %arg1 : i32, i32, i32
  }
}

</mosaic_0001>

<bundles_post_ra>
// kernel: tpu_custom_call.1
= control target key start
LH: loop header
LB: loop body
LE: loop exit
PB: predicated region body
PF: predicated region fallthrough
CT: control target
= control target key end

     0   :  { %9 = vsyncpa [#allocation3], 0  ;;  %s928_s0 = inlined_call_operand.vmem [shape: f32[8,4], index: 0, kind: input, shape index: {}]   ;;  %s929_s1 = inlined_call_operand.vmem [shape: f32[8,1], index: 1, kind: input, shape index: {}]   ;;  %s930_s2 = inlined_call_operand.hbm [shape: f32[2,4,256], index: 2, kind: input, shape index: {}]   ;;  %s931_s3 = inlined_call_operand.vmem [shape: f32[2,8,256], index: 3, kind: input, shape index: {}]   ;;  %s932_s4 = inlined_call_operand.hbm [shape: f32[2,8,256], index: 4, kind: output, shape index: {}]  }
   0x1   :  { %11 = vsyncpa [#allocation3 + $0x1], 0 }
   0x2   :  { %12 = vsyncpa [#allocation4], 0 }
   0x3   :  { %14 = vsyncpa [#allocation4 + $0x1], 0  ;;  %s744_s15 = smov 0   ;;  %s746_s16 = smov 0  }
   0x4   :  { %s748_s17 = smov 0   ;;  %s750_s18 = smov 0  }
   0x5   :  { %s752_s19 = smov 0   ;;  %s754_s20 = smov 0  }
   0x6 LB: > { %s509_s21 = sadd.s32 4294967295, %s711_s20   ;;  %s510_s22 = sadd.s32 4294967294, %s711_s20   ;;  %s711_s20 = sphi %s754_s20, %s20_s20   ;;  %s707_s19 = sphi %s752_s19, %s948_s19   ;;  %s703_s18 = sphi %s750_s18, %s947_s18   ;;  %s699_s17 = sphi %s748_s17, %s946_s17   ;;  %s695_s16 = sphi %s746_s16, %s945_s16   ;;  %s691_s15 = sphi %s744_s15, %s944_s15  }
   0x7   : > { %s32_s23 = sadd.s32 1, %s707_s19  ;;  %s83_s24 = sadd.s32 1, %s699_s17 }
   0x8   : > { %p34_p0 = scmp.ge.s32.totalorder %s32_s23, 2  ;;  %p90_p1 = scmp.ne.s32.totalorder %s699_s17, %s695_s16 }
   0x9   : > { %p91_p2 = scmp.eq.s32.totalorder %s711_s20, 0  ;;  %p96_p3 = scmp.ne.s32.totalorder %s695_s16, %s691_s15 }
   0xa   : > { %s950_s23 = smov (%p34_p0, %s32_s23), 0  ;;  %p97_p5 = scmp.eq.s32.totalorder %s509_s21, 0 }
   0xb   : > { %p785_p4 = por %p91_p2, %p90_p1  ;;  %s78_s26 = ssub.s32 %s707_s19, %s950_s23 }
   0xc   : > { %p150_p6 = scmp.eq.s32.totalorder %s509_s21, 1  ;;  %p81_p7 = scmp.eq.s32.totalorder %s78_s26, 0 }
   0xd   : > { %p791_p8 = por %p97_p5, %p96_p3  ;;  %p156_p10 = scmp.eq.s32.totalorder %s510_s22, 1 }
   0xe   : > { %p795_p9 = por %p150_p6, %p90_p1  ;;  %p541_p13 = scmp.lt.s32.totalorder %s711_s20, 2 }
   0xf   : > { %s800_s29 = scalar_select %p81_p7, %s699_s17, %s83_s24  }
  0x10   : > { %s936_s28 = scalar_select %p795_p9, 1, 0 }
  0x11   : > { %p802_p11 = por %p156_p10, %p96_p3  ;;  %s182_s5 = sand.u32 1, %s699_s17  }
  0x12   : > { %s513_s6 = sshll.u32 %s182_s5, 3  ;;  %s526_s7 = sshll.u32 %s707_s19, 7 }
  0x13   : > { %s937_s30 = scalar_select %p802_p11, 1, 0 }
  0x14   : > { %s813_s10 = scalar_lea.hbm %s930_s2, %s526_s7  ;;  %s186_s11 = scalar_lea.vmem [#allocation2], %s513_s6 }
  0x15   : > { %s196_s12 = sshll.u32 %s186_s11, 4  ;;  %p819_p0 = pnand %p541_p13, %p785_p4  ;;  %s815_s12 = int_to_ptr.vmem [resolvable:$true] %s196_s12 }
  0x16   : > { %s183_s14 = scalar_lea.sflag [#allocation3], %s182_s5  ;;  %s599_s21 = scalar_lea.hbm %s813_s10, 128 }
  0x17   : > { %p600_p3 = scmp.ne.s32.totalorder %s813_s10, %s599_s21  ;;  %p601_p5 = pneg %p819_p0 }
  0x18   : > { %s604_s25 = scalar_lea.hbm %s930_s2, 256  ;;  %p605_p4 = scmp.lt.u32.totalorder %s813_s10, %s930_s2 }
  0x19   : > { %p602_p6 = pnand %p601_p5, %p600_p3  ;;  %p606_p10 = scmp.lt.u32.totalorder %s604_s25, %s599_s21 }
  0x1a   : > { %p608_p12 = scmp.lt.u32.totalorder %s599_s21, %s813_s10 }
  0x1b   : > { %p603_p7 = pneg %p602_p6  ;;  %p607_p13 = por %p606_p10, %p605_p4 }
  0x1d   : > { %p609_p1 = por %p608_p12, %p607_p13 }
  0x1f   : > { %p610_p2 = pnand %p609_p1, %p603_p7 }
  0x21   : > { %613 = shalt.err (!%p610_p2)
}
  0x22   : > { %s614_s5 = scalar_lea.vmem %s815_s12, 128  ;;  %s713_s7 = smov [#allocation2]  }
  0x23   : > { %p615_p3 = scmp.ne.s32.totalorder %s815_s12, %s614_s5  ;;  %s619_s8 = sshll.u32 %s713_s7, 4  ;;  %s620_s8 = int_to_ptr.vmem [resolvable:$false] %s619_s8 }
  0x24   : > { %s621_s9 = scalar_lea.vmem %s620_s8, 256  ;;  %p622_p9 = scmp.lt.s32.totalorder %s815_s12, %s620_s8 }
  0x25   : > { %p617_p6 = pnand %p615_p3, %p601_p5  ;;  %p623_p4 = scmp.lt.s32.totalorder %s621_s9, %s614_s5 }
  0x27   : > { %p618_p11 = pneg %p617_p6  ;;  %p624_p10 = por %p623_p4, %p622_p9 }
  0x29   : > { %p625_p12 = pnand %p624_p10, %p618_p11 }
  0x2b   : > { %628 = shalt.err (!%p625_p12)
}
  0x2c   : > { %536 = dma.hbm_to_vmem [thread:$0]  (!%p819_p0), %s813_s10, 128, %s815_s12, %s183_s14  }
  0x2d   : > { %p939_p1 = scmp.lt.s32.totalorder %s711_s20, 3  ;;  %p940_p2 = scmp.ge.s32.totalorder %s711_s20, 1 }
  0x2f   : > { %p215_p5 = pnand %p940_p2, %p939_p1 }
  0x30   : > { %s855_s11 = sand.u32 (!%p215_p5), 1, %s695_s16  }
  0x31   : > { %218 = sbr.rel (%p215_p5) target bundleno = 215 (0xd7), region = 36  ;;  %s517_s21 = sshll.u32 (!%p215_p5), %s855_s11, 3 }
  0x32   : > { %s221_s22 = scalar_lea.sflag (!%p215_p5), [#allocation3], %s855_s11  ;;  %s224_s24 = scalar_lea.vmem (!%p215_p5), [#allocation2], %s517_s21 }
  0x38   : > { %682 = dma.done.wait (%p791_p8), %s221_s22, 128  }
  0x39   : > { %684 = vsyncadd (%p791_p8), %s221_s22, 4294967168  ;;  %v714_v0 = vmov 0   ;;  %v715_v1 = vmov 1   ;;  %v274_v2 = vld [vmem:[%s929_s1] sm:$0xff]  ;;  %v716_v4 = vmov 2   ;;  %v717_v5 = vmov 3  }
  0x3a   : > { %595 = vset.pattern.permute.xlu0 %v714_v0  ;;  %596 = vset.pattern.permute.xlu1 %v715_v1  ;;  %v273_v3 = vld [vmem:[%s928_s0] sm:$0xff]  ;;  %v288_v6 = vlaneseq  ;;  %p260_p8 = scmp.lt.s32.totalorder %s703_s18, 1  ;;  %v270_v12 = vld [vmem:[%s224_s24] sm:$0xff]  ;;  %s518_s7 = sshll.u32 %s855_s11, 4 }
  0x3b   : > { %277 = vperm.xlu0 %595, %v274_v2   ;;  %311 = vperm.xlu1 %596, %v273_v3   ;;  %s528_s8 = sshll.u32 %s703_s18, 8  ;;  %s257_s9 = scalar_lea.vmem [#allocation5], %s518_s7 }
  0x3c   : > { %v289_v7 = vshrl.u32 %v288_v6, 7  ;;  %s261_s27 = scalar_select %p260_p8, %s703_s18, 1 }
  0x3d   : > { %s407_s21 = sshll.u32 %s257_s9, 4  ;;  %s879_s10 = scalar_lea.hbm %s932_s4, %s528_s8  ;;  %s881_s21 = int_to_ptr.vmem [resolvable:$true] %s407_s21 }
  0x3e   : > { %v290_v8 = vsub.s32 0, %v289_v7  ;;  %v294_v9 = vsub.s32 4, %v289_v7  ;;  %v316_v10 = vsub.s32 1, %v289_v7  ;;  %v320_v11 = vsub.s32 5, %v289_v7  ;;  %s527_s25 = sshll.u32 %s261_s27, 4  ;;  %s391_s12 = scalar_lea.sflag [#allocation4], %s855_s11 }
  0x3f   : > { %284 = vperm.xlu0 %595, %v273_v3   ;;  %597 = vset.pattern.permute.xlu1 %v716_v4  ;;  %v342_v13 = vsub.s32 2, %v289_v7  ;;  %v346_v14 = vsub.s32 6, %v289_v7  ;;  %v368_v19 = vsub.s32 3, %v289_v7  ;;  %v372_v20 = vsub.s32 7, %v289_v7  ;;  %s267_s5 = scalar_lea.vmem %s931_s3, %s527_s25  ;;  %s629_s18 = scalar_lea.vmem %s881_s21, 256 }
  0x40   : > { %337 = vperm.xlu1 %597, %v273_v3   ;;  %v291_v15 = vrot.slane %v270_v12, %v290_v8  ;;  %v295_v16 = vrot.slane %v270_v12, %v294_v9  ;;  %v317_v17 = vrot.slane %v270_v12, %v316_v10  ;;  %v321_v18 = vrot.slane %v270_v12, %v320_v11  ;;  %v271_v27 = vld [vmem:[%s267_s5] sm:$0xff]  ;;  %v272_v28 = vld [vmem:[%s267_s5 + $0x8] sm:$0xff]  ;;  %p630_p9 = scmp.ne.s32.totalorder %s881_s21, %s629_s18  ;;  %p941_p11 = scmp.ne.s32.totalorder %s936_s28, 0 }
  0x41   : > { %v343_v21 = vrot.slane %v270_v12, %v342_v13  ;;  %v347_v22 = vrot.slane %v270_v12, %v346_v14  ;;  %v369_v31 = vrot.slane %v270_v12, %v368_v19  ;;  %v373_v32 = vrot.slane %v270_v12, %v372_v20  ;;  %s718_s13 = smov [#allocation5]  }
  0x42   : > { %v301_v25 = vrot.slane %v291_v15, %v290_v8  ;;  %v305_v26 = vrot.slane %v295_v16, %v290_v8  ;;  %v327_v29 = vrot.slane %v317_v17, %v316_v10  ;;  %v331_v30 = vrot.slane %v321_v18, %v316_v10  ;;  %p631_p0 = pnand %p630_p9, %p941_p11  ;;  %s633_s14 = sshll.u32 %s718_s13, 4  ;;  %s634_s14 = int_to_ptr.vmem [resolvable:$false] %s633_s14 }
  0x43   : > { %598 = vset.pattern.permute.xlu0 %v717_v5  ;;  %v353_v33 = vrot.slane %v343_v21, %v342_v13  ;;  %v357_v34 = vrot.slane %v347_v22, %v342_v13  ;;  %v379_v43 = vrot.slane %v369_v31, %v368_v19  ;;  %v383_v44 = vrot.slane %v373_v32, %v368_v19  ;;  %s635_s27 = scalar_lea.vmem %s634_s14, 512  ;;  %p636_p13 = scmp.lt.s32.totalorder %s881_s21, %s634_s14 }
  0x44   : > { %363 = vperm.xlu0 %598, %v273_v3   ;;  %p632_p7 = pneg %p631_p0  ;;  %p637_p3 = scmp.lt.s32.totalorder %s635_s27, %s629_s18 }
  0x46   : > { %p638_p6 = por %p637_p3, %p636_p13 }
  0x48   : > { %p639_p4 = pnand %p638_p6, %p632_p7 }
  0xba   : > { %v278_v23 = vpop.permute.xlu0 %277  ;;  %v312_v24 = vpop.permute.xlu1 %311 }
  0xbb   : > { %v280_v36 = vadd.f32 %v278_v23, %v271_v27  ;;  %v281_v37 = vadd.f32 %v278_v23, %v272_v28  ;;  %v332_v41 = vmul.f32 %v327_v29, %v312_v24  ;;  %v333_v42 = vmul.f32 %v331_v30, %v312_v24 }
  0xbe   : > { %v285_v35 = vpop.permute.xlu0 %284 }
  0xbf   : > { %v306_v38 = vmul.f32 %v301_v25, %v285_v35  ;;  %v307_v39 = vmul.f32 %v305_v26, %v285_v35  ;;  %v338_v40 = vpop.permute.xlu1 %337 }
  0xc0   : > { %v358_v47 = vmul.f32 %v353_v33, %v338_v40  ;;  %v359_v48 = vmul.f32 %v357_v34, %v338_v40 }
  0xc1   : > { %v308_v45 = vadd.f32 %v306_v38, %v280_v36  ;;  %v309_v46 = vadd.f32 %v307_v39, %v281_v37 }
  0xc3   : > { %v334_v49 = vadd.f32 %v332_v41, %v308_v45  ;;  %v335_v50 = vadd.f32 %v333_v42, %v309_v46  ;;  %v364_v51 = vpop.permute.xlu0 %363 }
  0xc4   : > { %v384_v52 = vmul.f32 %v379_v43, %v364_v51  ;;  %v385_v53 = vmul.f32 %v383_v44, %v364_v51 }
  0xc5   : > { %v360_v54 = vadd.f32 %v358_v47, %v334_v49  ;;  %v361_v55 = vadd.f32 %v359_v48, %v335_v50 }
  0xc7   : > { %v386_v56 = vadd.f32 %v384_v52, %v360_v54  ;;  %v387_v57 = vadd.f32 %v385_v53, %v361_v55 }
  0xc9   : > { %388 = vst [vmem:[%s257_s9] sm:$0xff] %v386_v56  ;;  %389 = vst [vmem:[%s257_s9 + $0x8] sm:$0xff] %v387_v57 }
  0xca   : > { %642 = shalt.err (!%p639_p4)
}
  0xcb   : > { %s643_s11 = scalar_lea.hbm %s879_s10, 256  ;;  %s647_s6 = scalar_lea.hbm %s932_s4, 512 }
  0xcc   : > { %p644_p10 = scmp.ne.s32.totalorder %s879_s10, %s643_s11  ;;  %p648_p2 = scmp.lt.u32.totalorder %s879_s10, %s932_s4 }
  0xcd   : > { %p649_p5 = scmp.lt.u32.totalorder %s647_s6, %s643_s11  ;;  %p651_p9 = scmp.lt.u32.totalorder %s643_s11, %s879_s10 }
  0xce   : > { %p645_p12 = pnand %p644_p10, %p941_p11 }
  0xcf   : > { %p650_p8 = por %p649_p5, %p648_p2 }
  0xd0   : > { %p646_p1 = pneg %p645_p12 }
  0xd1   : > { %p652_p0 = por %p651_p9, %p650_p8 }
  0xd3   : > { %p653_p7 = pnand %p652_p0, %p646_p1 }
  0xd5   : > { %656 = shalt.err (!%p653_p7)
}
  0xd6   : > { %531 = dma.vmem_to_hbm [thread:$0]  (%p941_p11), %s881_s21, 256, %s879_s10, %s391_s12  }
  0xd7 PF: > { %s419_s8 = sand.u32 1, %s691_s15   ;;  %p942_p13 = scmp.ne.s32.totalorder %s937_s30, 0 }
  0xd8   : > { %p943_p3 = scmp.ge.s32.totalorder %s711_s20, 2  ;;  %s420_s9 = scalar_lea.sflag [#allocation4], %s419_s8 }
  0xda   : > { %p538_p6 = pnand %p943_p3, %p942_p13 }
  0xdc   : > { %686 = dma.done.wait (!%p538_p6), %s420_s9, 256  }
  0xdd   : > { %688 = vsyncadd (!%p538_p6), %s420_s9, 4294967040  ;;  %s20_s20 = sadd.s32 1, %s711_s20   ;;  %s944_s15 = smov %s695_s16 }
  0xde   : > { %p17_p4 = scmp.ge.s32.totalorder %s20_s20, 4   ;;  %s945_s16 = smov %s699_s17 }
  0xdf   : > { %s946_s17 = smov %s800_s29  ;;  %s947_s18 = smov %s707_s19 }
  0xe0   : > { %s948_s19 = smov %s950_s23  ;;  %19 = sbr.rel (!%p17_p4) target bundleno = 6 (0x6), region = 84 }
  0xe7   :  { %425 = vsyncpa [#allocation3], 1 }
  0xe8   :  { %427 = vsyncpa [#allocation3 + $0x1], 1 }
  0xe9   :  { %428 = vsyncpa [#allocation4], 1 }
  0xea   :  { %430 = vsyncpa [#allocation4 + $0x1], 1 }

</bundles_post_ra>
